<compile_context>
chip_gen: v6e
topology: v6e:2x2x1
jax: 0.10.0
libtpu: 0.0.40
codegen_flags: <defaults>
</compile_context>

<pallas_src>
import jax
import jax.numpy as jnp
from jax.experimental import pallas as pl
from jax.experimental.pallas import tpu as pltpu

_NEG = -1e30  # pad value for gloss-logit bias so padded lanes vanish in softmax


def _round_up(x, m):
    return ((x + m - 1) // m) * m


def _cdiv(a, b):
    return -(-a // b)


def _vmem_budget():
    """Per-generation (patch-block budget, scoped vmem limit) in bytes."""
    try:
        cap = int(pltpu.get_tpu_info().vmem_capacity_bytes)
    except Exception:
        cap = 64 << 20  # conservative: assume v7x-sized VMEM
    if cap >= (100 << 20):        # v5e / v6e: 128 MiB per TensorCore
        return 8 << 20, 64 << 20
    return 4 << 20, 32 << 20      # v7x: 64 MiB per TensorCore


# ----------------------------------------------------------------------------
# Glue: im2col for Conv3d(k=3, stride=2, pad=1) over NCDHW input.
# Single fused XLA patch-extraction op; run it on bf16 input from the caller.
# K is ordered (Cin, kt, kh, kw) -- matches w_conv_mat below.
# ----------------------------------------------------------------------------
def extract_patches(x):
    """x: (B, Cin, T, H, W) -> (B*To, Ho*Wo, Cin*27) patches."""
    B, Cin, T, H, W = x.shape
    To = (T - 1) // 2 + 1
    Ho = (H - 1) // 2 + 1
    Wo = (W - 1) // 2 + 1
    p = jax.lax.conv_general_dilated_patches(
        x, filter_shape=(3, 3, 3), window_strides=(2, 2, 2),
        padding=((1, 1), (1, 1), (1, 1)))
    # p: (B, Cin*27, To, Ho, Wo), channel dim ordered (Cin, kt, kh, kw)
    p = jnp.transpose(p, (0, 2, 3, 4, 1))          # (B, To, Ho, Wo, Cin*27)
    return p.reshape(B * To, Ho * Wo, Cin * 27), (To, Ho, Wo)


# ----------------------------------------------------------------------------
# Fused kernel: conv-matmul + ReLU + (tiled) spatial sum pool + head + softmax
# Grid = (frame tiles [parallel], spatial tiles [arbitrary/reduction]).
# ----------------------------------------------------------------------------
def _make_encoder_kernel(S, ts, need_mask):
    inv_s = 1.0 / float(S)

    def kernel(p_ref, wc_ref, bc_ref, w1_ref, b1_ref, w2_ref, b2_ref,
               probs_ref, reps_ref, feat_acc):
        s = pl.program_id(1)

        @pl.when(s == 0)
        def _():
            feat_acc[...] = jnp.zeros_like(feat_acc)

        tf = feat_acc.shape[0]
        kp = p_ref.shape[-1]
        c1p = feat_acc.shape[-1]

        # --- 3D-conv stem as lane-dense bf16 matmul (MXU), f32 epilogue ------
        conv = jnp.dot(p_ref[...].reshape(tf * ts, kp), wc_ref[...],
                       preferred_element_type=jnp.float32)        # (tf*ts, C1p)
        conv = jnp.maximum(conv + bc_ref[...], 0.0).reshape(tf, ts, c1p)

        if need_mask:
            # padded spatial rows would otherwise add ReLU(bias) to the pool
            sp = jax.lax.broadcasted_iota(jnp.int32, (tf, ts, c1p), 1) + s * ts
            conv = jnp.where(sp < S, conv, 0.0)

        # --- fused spatial pool: running sum across the S grid axis ----------
        feat_acc[...] += jnp.sum(conv, axis=1)                     # (tf, C1p)

        @pl.when(s == pl.num_programs(1) - 1)
        def _():
            feat = feat_acc[...] * inv_s                           # mean = sum * 1/S
            # --- head: Linear + ReLU -> Linear -> softmax --------------------
            h = jnp.dot(feat.astype(jnp.bfloat16), w1_ref[...],
                        preferred_element_type=jnp.float32) + b1_ref[...]
            reps = jnp.maximum(h, 0.0)                             # (tf, Hdp)
            logits = jnp.dot(reps.astype(jnp.bfloat16), w2_ref[...],
                             preferred_element_type=jnp.float32) + b2_ref[...]
            m = jnp.max(logits, axis=-1, keepdims=True)
            e = jnp.exp(logits - m)
            # exact normalization (rows sum to 1; probs may feed CTC)
            probs_ref[...] = e / jnp.sum(e, axis=-1, keepdims=True)
            reps_ref[...] = reps.astype(reps_ref.dtype)

    return kernel


# ----------------------------------------------------------------------------
# Full VisualEncoder forward
# ----------------------------------------------------------------------------
def visual_encoder_forward(x, vid_lens, params):
    B, Cin, T, H, W = x.shape
    c1, hd = params["w1"].shape
    g = params["w2"].shape[1]

    # im2col in bf16 (single XLA op) -- halves glue HBM bytes vs f32 version
    patches, (To, Ho, Wo) = extract_patches(x.astype(jnp.bfloat16))
    n_frames, S, K = patches.shape

    # lane-pad every contraction/output channel dim to 128
    Kp = _round_up(K, 128)
    C1p = _round_up(c1, 128)
    Hdp = _round_up(hd, 128)
    Gp = _round_up(g, 128)

    patch_budget, vmem_limit = _vmem_budget()
    row_bytes = Kp * 2                        # one (1, Kp) bf16 patch row

    # spatial tile: as much of S as fits alongside >= 8 frames, then rebalance
    Sp8 = _round_up(S, 8)
    ts_max = min(Sp8, max(8, ((patch_budget // (8 * row_bytes)) // 8) * 8))
    n_s = _cdiv(Sp8, ts_max)
    ts = _round_up(_cdiv(Sp8, n_s), 8)
    Sp = n_s * ts
    need_mask = (Sp != S)

    # frame tile: fill the remaining budget; keep >=2 frame steps when possible
    tf = max(8, min(512, ((patch_budget // (ts * row_bytes)) // 8) * 8))
    if n_frames > 8:
        tf = min(tf, _round_up(_cdiv(n_frames, 2), 8))   # v7x: both TCs busy
    tf = min(tf, _round_up(n_frames, 8))
    M2p = _round_up(n_frames, tf)

    # pad patches (frames, spatial rows, lanes); weights padded + cast to bf16
    patches = jnp.pad(patches, ((0, M2p - n_frames), (0, Sp - S), (0, Kp - K)))

    wc = jnp.pad(params["w_conv_mat"], ((0, Kp - K), (0, C1p - c1))).astype(jnp.bfloat16)
    bc = jnp.pad(params["b_conv"], ((0, 0), (0, C1p - c1)))
    w1 = jnp.pad(params["w1"], ((0, C1p - c1), (0, Hdp - hd))).astype(jnp.bfloat16)
    b1 = jnp.pad(params["b1"], ((0, 0), (0, Hdp - hd)))
    w2 = jnp.pad(params["w2"], ((0, Hdp - hd), (0, Gp - g))).astype(jnp.bfloat16)
    b2 = jnp.pad(params["b2"], ((0, 0), (0, Gp - g)), constant_values=_NEG)

    probs_p, reps_p = pl.pallas_call(
        _make_encoder_kernel(S, ts, need_mask),
        out_shape=(
            jax.ShapeDtypeStruct((M2p, Gp), jnp.float32),
            jax.ShapeDtypeStruct((M2p, Hdp), jnp.bfloat16),   # half writeback
        ),
        grid_spec=pltpu.PrefetchScalarGridSpec(
            num_scalar_prefetch=0,
            grid=(M2p // tf, n_s),
            in_specs=[
                pl.BlockSpec((tf, ts, Kp), lambda i, s: (i, s, 0)),  # patches
                pl.BlockSpec((Kp, C1p), lambda i, s: (0, 0)),        # conv weight
                pl.BlockSpec((1, C1p), lambda i, s: (0, 0)),         # conv bias
                pl.BlockSpec((C1p, Hdp), lambda i, s: (0, 0)),       # head w1
                pl.BlockSpec((1, Hdp), lambda i, s: (0, 0)),         # head b1
                pl.BlockSpec((Hdp, Gp), lambda i, s: (0, 0)),        # head w2
                pl.BlockSpec((1, Gp), lambda i, s: (0, 0)),          # head b2
            ],
            out_specs=(
                pl.BlockSpec((tf, Gp), lambda i, s: (i, 0)),         # gloss_probs
                pl.BlockSpec((tf, Hdp), lambda i, s: (i, 0)),        # gloss_reps
            ),
            scratch_shapes=[pltpu.VMEM((tf, C1p), jnp.float32)],     # feat acc
        ),
        compiler_params=pltpu.CompilerParams(
            dimension_semantics=("parallel", "arbitrary"),
            vmem_limit_bytes=vmem_limit,
        ),
    )(patches, wc, bc, w1, b1, w2, b2)

    # length mask from vid_lens (backbone returns it; the reference forward
    # passes mask=None to the head, so it is not applied here)
    out_lens = (vid_lens - 1) // 2 + 1
    _ = jnp.arange(To)[None, :] < out_lens[:, None]

    gloss_probs = probs_p[:n_frames, :g].reshape(B, To, g)
    gloss_reps = reps_p[:n_frames, :hd].astype(jnp.float32).reshape(B, To, hd)
    return gloss_probs, gloss_reps


# ----------------------------------------------------------------------------
# Pure-JAX reference (f32) for correctness checking
# ----------------------------------------------------------------------------
def reference_forward(x, params):
    c1, hd = params["w1"].shape
    g = params["w2"].shape[1]
    B = x.shape[0]
    patches, (To, _, _) = extract_patches(x)                       # f32 path
    conv = jnp.einsum("msk,kc->msc", patches, params["w_conv_mat"])
    conv = jnp.maximum(conv + params["b_conv"], 0.0)
    feat = conv.mean(axis=1)                                       # (M, C1)
    reps = jnp.maximum(feat @ params["w1"] + params["b1"], 0.0)
    logits = reps @ params["w2"] + params["b2"]
    probs = jax.nn.softmax(logits, axis=-1)
    return probs.reshape(B, To, g), reps.reshape(B, To, hd)


# ----------------------------------------------------------------------------
# Deterministic parameter init (logical, unpadded shapes)
# ----------------------------------------------------------------------------
def init_params(key, cin=3, c1=32, hd=64, g=64):
    ks = jax.random.split(key, 6)
    w_conv = jax.random.normal(ks[0], (c1, cin, 3, 3, 3), jnp.float32) * 0.05
    b_conv = jax.random.normal(ks[1], (1, c1), jnp.float32) * 0.01
    w1 = jax.random.normal(ks[2], (c1, hd), jnp.float32) * 0.05
    b1 = jax.random.normal(ks[3], (1, hd), jnp.float32) * 0.01
    w2 = jax.random.normal(ks[4], (hd, g), jnp.float32) * 0.05
    b2 = jax.random.normal(ks[5], (1, g), jnp.float32) * 0.01
    return {
        "w_conv_mat": w_conv.reshape(c1, cin * 27).T,   # (K=81, C1), K=(Cin,kt,kh,kw)
        "b_conv": b_conv,
        "w1": w1, "b1": b1,
        "w2": w2, "b2": b2,
    }


if __name__ == "__main__":
    key = jax.random.PRNGKey(0)
    pkey, xkey = jax.random.split(key)
    params = init_params(pkey)

    # small video batch, PyTorch NCDHW convention: (B, Cin, T, H, W)
    B, Cin, T, H, W = 2, 3, 8, 16, 16
    x = jax.random.normal(xkey, (B, Cin, T, H, W), jnp.float32)
    vid_lens = jnp.array([8, 6], jnp.int32)

    gloss_probs, gloss_reps = jax.jit(visual_encoder_forward)(x, vid_lens, params)
    jax.block_until_ready((gloss_probs, gloss_reps))

    assert gloss_probs.shape == (B, 4, 64)
    assert gloss_reps.shape == (B, 4, 64)
    # exact softmax divide -> rows sum to ~1 at f32 precision
    assert bool(jnp.allclose(gloss_probs.sum(-1), 1.0, atol=1e-3))

    # compare against pure-JAX f32 reference (bf16 matmul error tolerance)
    ref_probs, ref_reps = jax.jit(reference_forward)(x, params)
    assert bool(jnp.allclose(gloss_probs, ref_probs, atol=2e-2))
    assert bool(jnp.allclose(gloss_reps, ref_reps, atol=3e-2))

    print("KERNEL_OK")
</pallas_src>

<mosaic_0001>
module attributes {stable_mosaic.version = 11 : i64} {
  func.func @kernel(%arg0: i32, %arg1: i32, %arg2: memref<8x64x128xbf16, #tpu.memory_space<vmem>>, %arg3: memref<128x128xbf16, #tpu.memory_space<vmem>>, %arg4: memref<1x128xf32, #tpu.memory_space<vmem>>, %arg5: memref<128x128xbf16, #tpu.memory_space<vmem>>, %arg6: memref<1x128xf32, #tpu.memory_space<vmem>>, %arg7: memref<128x128xbf16, #tpu.memory_space<vmem>>, %arg8: memref<1x128xf32, #tpu.memory_space<vmem>>, %arg9: memref<8x128xf32, #tpu.memory_space<vmem>>, %arg10: memref<8x128xbf16, #tpu.memory_space<vmem>>, %arg11: memref<8x128xf32, #tpu.memory_space<vmem>>) attributes {dimension_semantics = [#tpu.dimension_semantics<parallel>, #tpu.dimension_semantics<arbitrary>], iteration_bounds = array<i64: 1, 1>, scalar_prefetch = 0 : i64, scratch_operands = 1 : i64, tpu.core_type = #tpu.core_type<tc>, window_params = [{transform_indices = @transform_0, window_bounds = array<i64: 8, 64, 128>}, {pipeline_mode = #tpu.pipeline_mode<synchronous>, transform_indices = @transform_1, window_bounds = array<i64: 128, 128>}, {pipeline_mode = #tpu.pipeline_mode<synchronous>, transform_indices = @transform_2, window_bounds = array<i64: 1, 128>}, {pipeline_mode = #tpu.pipeline_mode<synchronous>, transform_indices = @transform_3, window_bounds = array<i64: 128, 128>}, {pipeline_mode = #tpu.pipeline_mode<synchronous>, transform_indices = @transform_4, window_bounds = array<i64: 1, 128>}, {pipeline_mode = #tpu.pipeline_mode<synchronous>, transform_indices = @transform_5, window_bounds = array<i64: 128, 128>}, {pipeline_mode = #tpu.pipeline_mode<synchronous>, transform_indices = @transform_6, window_bounds = array<i64: 1, 128>}, {transform_indices = @transform_7, window_bounds = array<i64: 8, 128>}, {transform_indices = @transform_8, window_bounds = array<i64: 8, 128>}]} {
    %c0_i32 = arith.constant 0 : i32
    %0 = arith.cmpi eq, %arg1, %c0_i32 : i32
    %1 = arith.extui %0 : i1 to i32
    %c0_i32_0 = arith.constant 0 : i32
    %2 = arith.cmpi ne, %1, %c0_i32_0 : i32
    scf.if %2 {
      %cst_15 = arith.constant 0.000000e+00 : f32
      %20 = vector.broadcast %cst_15 : f32 to vector<8x128xf32>
      %c0_16 = arith.constant 0 : index
      %c0_17 = arith.constant 0 : index
      %21 = vector.load %arg11[%c0_16, %c0_17] : memref<8x128xf32, #tpu.memory_space<vmem>>, vector<8x128xf32>
      tpu.vector_store %arg11[%c0_16, %c0_17], %20 {strides = array<i32>} : memref<8x128xf32, #tpu.memory_space<vmem>>, vector<8x128xf32>,
    } else {
    }
    %c0 = arith.constant 0 : index
    %c0_1 = arith.constant 0 : index
    %c0_2 = arith.constant 0 : index
    %3 = vector.load %arg2[%c0, %c0_1, %c0_2] : memref<8x64x128xbf16, #tpu.memory_space<vmem>>, vector<8x64x128xbf16>
    %4 = vector.shape_cast %3 : vector<8x64x128xbf16> to vector<512x128xbf16>
    %c0_3 = arith.constant 0 : index
    %c0_4 = arith.constant 0 : index
    %5 = vector.load %arg3[%c0_3, %c0_4] : memref<128x128xbf16, #tpu.memory_space<vmem>>, vector<128x128xbf16>
    %cst = arith.constant dense<0.000000e+00> : vector<512x128xf32>
    %6 = tpu.matmul %4, %5, %cst {dimension_numbers = #tpu.dot_dimension_numbers<[1], [0], [0], [1], [0, 0, 1, 1], [], []>} : vector<512x128xbf16>, vector<128x128xbf16>, vector<512x128xf32> -> vector<512x128xf32>
    %c0_5 = arith.constant 0 : index
    %c0_6 = arith.constant 0 : index
    %7 = vector.load %arg4[%c0_5, %c0_6] : memref<1x128xf32, #tpu.memory_space<vmem>>, vector<1x128xf32>
    %8 = vector.broadcast %7 : vector<1x128xf32> to vector<512x128xf32>
    %9 = arith.addf %6, %8 : vector<512x128xf32>
    %cst_7 = arith.constant 0.000000e+00 : f32
    %10 = vector.broadcast %cst_7 : f32 to vector<512x128xf32>
    %11 = arith.maximumf %9, %10 : vector<512x128xf32>
    %12 = vector.shape_cast %11 : vector<512x128xf32> to vector<8x64x128xf32>
    %c0_8 = arith.constant 0 : index
    %c0_9 = arith.constant 0 : index
    %13 = vector.load %arg11[%c0_8, %c0_9] : memref<8x128xf32, #tpu.memory_space<vmem>>, vector<8x128xf32>
    %cst_10 = arith.constant dense<0.000000e+00> : vector<8x128xf32>
    %14 = vector.multi_reduction <add>, %12, %cst_10 [1] : vector<8x64x128xf32> to vector<8x128xf32>
    %15 = arith.addf %13, %14 : vector<8x128xf32>
    %c0_11 = arith.constant 0 : index
    %c0_12 = arith.constant 0 : index
    %16 = vector.load %arg11[%c0_11, %c0_12] : memref<8x128xf32, #tpu.memory_space<vmem>>, vector<8x128xf32>
    tpu.vector_store %arg11[%c0_11, %c0_12], %15 {strides = array<i32>} : memref<8x128xf32, #tpu.memory_space<vmem>>, vector<8x128xf32>,
    %c0_i32_13 = arith.constant 0 : i32
    %17 = arith.cmpi eq, %arg1, %c0_i32_13 : i32
    %18 = arith.extui %17 : i1 to i32
    %c0_i32_14 = arith.constant 0 : i32
    %19 = arith.cmpi ne, %18, %c0_i32_14 : i32
    scf.if %19 {
      %c0_15 = arith.constant 0 : index
      %c0_16 = arith.constant 0 : index
      %20 = vector.load %arg11[%c0_15, %c0_16] : memref<8x128xf32, #tpu.memory_space<vmem>>, vector<8x128xf32>
      %cst_17 = arith.constant 1.562500e-02 : f32
      %21 = vector.broadcast %cst_17 : f32 to vector<8x128xf32>
      %22 = arith.mulf %20, %21 : vector<8x128xf32>
      %23 = arith.truncf %22 : vector<8x128xf32> to vector<8x128xbf16>
      %c0_18 = arith.constant 0 : index
      %c0_19 = arith.constant 0 : index
      %24 = vector.load %arg5[%c0_18, %c0_19] : memref<128x128xbf16, #tpu.memory_space<vmem>>, vector<128x128xbf16>
      %cst_20 = arith.constant dense<0.000000e+00> : vector<8x128xf32>
      %25 = tpu.matmul %23, %24, %cst_20 {dimension_numbers = #tpu.dot_dimension_numbers<[1], [0], [0], [1], [0, 0, 1, 1], [], []>} : vector<8x128xbf16>, vector<128x128xbf16>, vector<8x128xf32> -> vector<8x128xf32>
      %c0_21 = arith.constant 0 : index
      %c0_22 = arith.constant 0 : index
      %26 = vector.load %arg6[%c0_21, %c0_22] : memref<1x128xf32, #tpu.memory_space<vmem>>, vector<1x128xf32>
      %27 = vector.broadcast %26 : vector<1x128xf32> to vector<8x128xf32>
      %28 = arith.addf %25, %27 : vector<8x128xf32>
      %cst_23 = arith.constant 0.000000e+00 : f32
      %29 = vector.broadcast %cst_23 : f32 to vector<8x128xf32>
      %30 = arith.maximumf %28, %29 : vector<8x128xf32>
      %31 = arith.truncf %30 : vector<8x128xf32> to vector<8x128xbf16>
      %c0_24 = arith.constant 0 : index
      %c0_25 = arith.constant 0 : index
      %32 = vector.load %arg7[%c0_24, %c0_25] : memref<128x128xbf16, #tpu.memory_space<vmem>>, vector<128x128xbf16>
      %cst_26 = arith.constant dense<0.000000e+00> : vector<8x128xf32>
      %33 = tpu.matmul %31, %32, %cst_26 {dimension_numbers = #tpu.dot_dimension_numbers<[1], [0], [0], [1], [0, 0, 1, 1], [], []>} : vector<8x128xbf16>, vector<128x128xbf16>, vector<8x128xf32> -> vector<8x128xf32>
      %c0_27 = arith.constant 0 : index
      %c0_28 = arith.constant 0 : index
      %34 = vector.load %arg8[%c0_27, %c0_28] : memref<1x128xf32, #tpu.memory_space<vmem>>, vector<1x128xf32>
      %35 = vector.broadcast %34 : vector<1x128xf32> to vector<8x128xf32>
      %36 = arith.addf %33, %35 : vector<8x128xf32>
      %cst_29 = arith.constant dense<0xFF800000> : vector<8xf32>
      %37 = vector.multi_reduction <maximumf>, %36, %cst_29 [1] : vector<8x128xf32> to vector<8xf32>
      %38 = vector.shape_cast %37 : vector<8xf32> to vector<8x1xf32>
      %39 = vector.broadcast %38 : vector<8x1xf32> to vector<8x128xf32>
      %40 = arith.subf %36, %39 : vector<8x128xf32>
      %41 = math.exp %40 : vector<8x128xf32>
      %cst_30 = arith.constant dense<0.000000e+00> : vector<8xf32>
      %42 = vector.multi_reduction <add>, %41, %cst_30 [1] : vector<8x128xf32> to vector<8xf32>
      %43 = vector.shape_cast %42 : vector<8xf32> to vector<8x1xf32>
      %44 = vector.broadcast %43 : vector<8x1xf32> to vector<8x128xf32>
      %45 = arith.divf %41, %44 : vector<8x128xf32>
      %c0_31 = arith.constant 0 : index
      %c0_32 = arith.constant 0 : index
      %46 = vector.load %arg9[%c0_31, %c0_32] : memref<8x128xf32, #tpu.memory_space<vmem>>, vector<8x128xf32>
      tpu.vector_store %arg9[%c0_31, %c0_32], %45 {strides = array<i32>} : memref<8x128xf32, #tpu.memory_space<vmem>>, vector<8x128xf32>,
      %47 = arith.truncf %30 : vector<8x128xf32> to vector<8x128xbf16>
      %c0_33 = arith.constant 0 : index
      %c0_34 = arith.constant 0 : index
      %48 = vector.load %arg10[%c0_33, %c0_34] : memref<8x128xbf16, #tpu.memory_space<vmem>>, vector<8x128xbf16>
      tpu.vector_store %arg10[%c0_33, %c0_34], %47 {strides = array<i32>} : memref<8x128xbf16, #tpu.memory_space<vmem>>, vector<8x128xbf16>,
    } else {
    }
    return
  }
  func.func @transform_0(%arg0: i32, %arg1: i32) -> (i32, i32, i32) {
    %c0_i32 = arith.constant 0 : i32
    %c0_i32_0 = arith.constant 0 : i32
    return %arg0, %arg1, %c0_i32 : i32, i32, i32
  }
  func.func @transform_1(%arg0: i32, %arg1: i32) -> (i32, i32) {
    %c0_i32 = arith.constant 0 : i32
    %c0_i32_0 = arith.constant 0 : i32
    %c0_i32_1 = arith.constant 0 : i32
    return %c0_i32, %c0_i32_0 : i32, i32
  }
  func.func @transform_2(%arg0: i32, %arg1: i32) -> (i32, i32) {
    %c0_i32 = arith.constant 0 : i32
    %c0_i32_0 = arith.constant 0 : i32
    %c0_i32_1 = arith.constant 0 : i32
    return %c0_i32, %c0_i32_0 : i32, i32
  }
  func.func @transform_3(%arg0: i32, %arg1: i32) -> (i32, i32) {
    %c0_i32 = arith.constant 0 : i32
    %c0_i32_0 = arith.constant 0 : i32
    %c0_i32_1 = arith.constant 0 : i32
    return %c0_i32, %c0_i32_0 : i32, i32
  }
  func.func @transform_4(%arg0: i32, %arg1: i32) -> (i32, i32) {
    %c0_i32 = arith.constant 0 : i32
    %c0_i32_0 = arith.constant 0 : i32
    %c0_i32_1 = arith.constant 0 : i32
    return %c0_i32, %c0_i32_0 : i32, i32
  }
  func.func @transform_5(%arg0: i32, %arg1: i32) -> (i32, i32) {
    %c0_i32 = arith.constant 0 : i32
    %c0_i32_0 = arith.constant 0 : i32
    %c0_i32_1 = arith.constant 0 : i32
    return %c0_i32, %c0_i32_0 : i32, i32
  }
  func.func @transform_6(%arg0: i32, %arg1: i32) -> (i32, i32) {
    %c0_i32 = arith.constant 0 : i32
    %c0_i32_0 = arith.constant 0 : i32
    %c0_i32_1 = arith.constant 0 : i32
    return %c0_i32, %c0_i32_0 : i32, i32
  }
  func.func @transform_7(%arg0: i32, %arg1: i32) -> (i32, i32) {
    %c0_i32 = arith.constant 0 : i32
    %c0_i32_0 = arith.constant 0 : i32
    return %arg0, %c0_i32 : i32, i32
  }
  func.func @transform_8(%arg0: i32, %arg1: i32) -> (i32, i32) {
    %c0_i32 = arith.constant 0 : i32
    %c0_i32_0 = arith.constant 0 : i32
    return %arg0, %c0_i32 : i32, i32
  }
}

</mosaic_0001>

<bundles_post_ra>
// kernel: visual_encoder_forward.1
= control target key start
LH: loop header
LB: loop body
LE: loop exit
PB: predicated region body
PF: predicated region fallthrough
CT: control target
= control target key end

     0   :  { %s1819_s0 = inlined_call_operand.vmem [shape: bf16[8,64,128], index: 0, kind: input, shape index: {}]   ;;  %s1820_s1 = inlined_call_operand.vmem [shape: bf16[128,128], index: 1, kind: input, shape index: {}]   ;;  %s1821_s2 = inlined_call_operand.vmem [shape: f32[1,128], index: 2, kind: input, shape index: {}]   ;;  %s1822_s3 = inlined_call_operand.vmem [shape: bf16[128,128], index: 3, kind: input, shape index: {}]   ;;  %s1823_s4 = inlined_call_operand.vmem [shape: f32[1,128], index: 4, kind: input, shape index: {}]   ;;  %s1824_s5 = inlined_call_operand.vmem [shape: bf16[128,128], index: 5, kind: input, shape index: {}]   ;;  %s1825_s6 = inlined_call_operand.vmem [shape: f32[1,128], index: 6, kind: input, shape index: {}]   ;;  %s1826_s7 = inlined_call_operand.hbm [shape: f32[8,128], index: 7, kind: output, shape index: {0}]   ;;  %s1827_s8 = inlined_call_operand.vmem [shape: bf16[8,128], index: 8, kind: output, shape index: {1}]  }
   0x1   :  { %v1360_v0 = vld [vmem:[%s1820_s1 + $0x38] sm:$0xff]   ;;  %v1361_v1 = vld [vmem:[%s1820_s1 + $0x30] sm:$0xff]   ;;  %v1362_v2 = vld [vmem:[%s1820_s1 + $0x28] sm:$0xff]  }
   0x2   :  { %1221 = vmatprep.subr.bf16.mxu0 %v1360_v0  ;;  %1341 = vmatprep.subr.bf16.mxu1 %v1360_v0  ;;  %v1363_v3 = vld [vmem:[%s1820_s1 + $0x20] sm:$0xff]   ;;  %v1364_v5 = vld [vmem:[%s1820_s1 + $0x18] sm:$0xff]   ;;  %v1365_v6 = vld [vmem:[%s1820_s1 + $0x10] sm:$0xff]  }
   0x3   :  { %1222 = vmatpush3.bf16.msra.mxu0 %v1360_v0  ;;  %1349 = vmatpush3.bf16.msra.mxu1 %v1360_v0  ;;  %v1368_v4 = vld [vmem:[%s1819_s0] sm:$0xff]   ;;  %v1366_v7 = vld [vmem:[%s1820_s1 + $0x8] sm:$0xff]   ;;  %v1380_v8 = vld [vmem:[%s1819_s0 + $0xb0] sm:$0xff]  }
   0x4   :  { %1223 = vmatprep.subr.bf16.mxu0 %v1361_v1  ;;  %1342 = vmatprep.subr.bf16.mxu1 %v1361_v1  ;;  %v1367_v9 = vld [vmem:[%s1820_s1] sm:$0xff]   ;;  %v1369_v10 = vld [vmem:[%s1819_s0 + $0x8] sm:$0xff]   ;;  %v1370_v11 = vld [vmem:[%s1819_s0 + $0x10] sm:$0xff]  }
   0x5   :  { %1237 = vmatprep.mubr.bf16.mxu0 %v1368_v4  ;;  %1281 = vmatprep.mubr.bf16.mxu1 %v1380_v8  ;;  %v1381_v12 = vld [vmem:[%s1819_s0 + $0xb8] sm:$0xff]   ;;  %v1384_v13 = vld [vmem:[%s1819_s0 + $0xc0] sm:$0xff]   ;;  %v1385_v16 = vld [vmem:[%s1819_s0 + $0xc8] sm:$0xff]  }
   0x6   :  { %v1371_v14 = vld [vmem:[%s1819_s0 + $0x18] sm:$0xff]   ;;  %v1372_v15 = vld [vmem:[%s1819_s0 + $0x20] sm:$0xff]   ;;  %v1388_v17 = vld [vmem:[%s1819_s0 + $0xd0] sm:$0xff]  }
   0x7   :  { %1224 = vmatpush3.bf16.msra.mxu0 %v1361_v1  ;;  %1350 = vmatpush3.bf16.msra.mxu1 %v1361_v1  ;;  %v1373_v18 = vld [vmem:[%s1819_s0 + $0x28] sm:$0xff]   ;;  %v1389_v19 = vld [vmem:[%s1819_s0 + $0xd8] sm:$0xff]   ;;  %v1374_v20 = vld [vmem:[%s1819_s0 + $0x30] sm:$0xff]  }
   0x8   :  { %1225 = vmatprep.subr.bf16.mxu0 %v1362_v2  ;;  %1343 = vmatprep.subr.bf16.mxu1 %v1362_v2  ;;  %v1392_v21 = vld [vmem:[%s1819_s0 + $0xe0] sm:$0xff]  }
   0xb   :  { %1226 = vmatpush3.bf16.msra.mxu0 %v1362_v2  ;;  %1351 = vmatpush3.bf16.msra.mxu1 %v1362_v2 }
   0xc   :  { %1227 = vmatprep.subr.bf16.mxu0 %v1363_v3  ;;  %1344 = vmatprep.subr.bf16.mxu1 %v1363_v3 }
   0xf   :  { %1228 = vmatpush3.bf16.msra.mxu0 %v1363_v3  ;;  %1352 = vmatpush3.bf16.msra.mxu1 %v1363_v3 }
  0x10   :  { %1229 = vmatprep.subr.bf16.mxu0 %v1364_v5  ;;  %1345 = vmatprep.subr.bf16.mxu1 %v1364_v5 }
  0x13   :  { %1230 = vmatpush3.bf16.msra.mxu0 %v1364_v5  ;;  %1353 = vmatpush3.bf16.msra.mxu1 %v1364_v5 }
  0x14   :  { %1231 = vmatprep.subr.bf16.mxu0 %v1365_v6  ;;  %1346 = vmatprep.subr.bf16.mxu1 %v1365_v6 }
  0x17   :  { %1232 = vmatpush3.bf16.msra.mxu0 %v1365_v6  ;;  %1354 = vmatpush3.bf16.msra.mxu1 %v1365_v6 }
  0x18   :  { %1233 = vmatprep.subr.bf16.mxu0 %v1366_v7  ;;  %1347 = vmatprep.subr.bf16.mxu1 %v1366_v7 }
  0x1b   :  { %1234 = vmatpush3.bf16.msra.mxu0 %v1366_v7  ;;  %1355 = vmatpush3.bf16.msra.mxu1 %v1366_v7 }
  0x1c   :  { %1235 = vmatprep.subr.bf16.mxu0 %v1367_v9  ;;  %1348 = vmatprep.subr.bf16.mxu1 %v1367_v9 }
  0x1f   :  { %1236 = vmatpush3.bf16.msra.mxu0 %v1367_v9  ;;  %1356 = vmatpush3.bf16.msra.mxu1 %v1367_v9 }
  0x22   :  { %1238 = vmatmul.mubr.bf16.vlgmr.msra.gmra.mxu0 %v1369_v10  ;;  %1282 = vmatmul.mubr.bf16.vlgmr.msra.gmra.mxu1 %v1381_v12 }
  0x23   :  { %1241 = vmatprep.mubr.bf16.mxu0 %v1370_v11  ;;  %1285 = vmatprep.mubr.bf16.mxu1 %v1384_v13 }
  0x2a   :  { %1242 = vmatmul.mubr.bf16.gmra.mxu0 %v1371_v14  ;;  %1286 = vmatmul.mubr.bf16.gmra.mxu1 %v1385_v16 }
  0x2b   :  { %1245 = vmatprep.mubr.bf16.mxu0 %v1372_v15  ;;  %1289 = vmatprep.mubr.bf16.mxu1 %v1388_v17 }
  0x32   :  { %1246 = vmatmul.mubr.bf16.gmra.mxu0 %v1373_v18  ;;  %1290 = vmatmul.mubr.bf16.gmra.mxu1 %v1389_v19 }
  0x33   :  { %14 = vsyncpa [#allocation4], 0  ;;  %1249 = vmatprep.mubr.bf16.mxu0 %v1374_v20  ;;  %1293 = vmatprep.mubr.bf16.mxu1 %v1392_v21  ;;  %v1375_v22 = vld [vmem:[%s1819_s0 + $0x38] sm:$0xff]   ;;  %v1393_v23 = vld [vmem:[%s1819_s0 + $0xe8] sm:$0xff]   ;;  %v1442_v41 = vmov 0.0   ;;  %vm1443_vm0 = vmmov 0  }
  0x34   :  { %v1376_v24 = vld [vmem:[%s1819_s0 + $0x40] sm:$0xff]   ;;  %v1396_v25 = vld [vmem:[%s1819_s0 + $0xf0] sm:$0xff]   ;;  %v1377_v26 = vld [vmem:[%s1819_s0 + $0x48] sm:$0xff]   ;;  %1301 = vmatprep.subr.bf16.mxu1 %v1442_v41  ;;  %vm828_vm1 = vcmask 1041409   ;;  %vm830_vm2 = vcmask 1042434   ;;  %vm832_vm3 = vcmask 1043459  }
  0x35   :  { %v1397_v27 = vld [vmem:[%s1819_s0 + $0xf8] sm:$0xff]   ;;  %v1378_v28 = vld [vmem:[%s1819_s0 + $0x50] sm:$0xff]   ;;  %v1382_v30 = vld [vmem:[%s1819_s0 + $0x60] sm:$0xff]   ;;  %vm834_vm4 = vcmask 1044484   ;;  %vm836_vm5 = vcmask 1045509   ;;  %vm838_vm6 = vcmask 1046534  }
  0x36   :  { %v1379_v29 = vld [vmem:[%s1819_s0 + $0x58] sm:$0xff]   ;;  %v1383_v31 = vld [vmem:[%s1819_s0 + $0x68] sm:$0xff]   ;;  %v1386_v32 = vld [vmem:[%s1819_s0 + $0x70] sm:$0xff]   ;;  %vm840_vm7 = vcmask 1047559  }
  0x37   :  { %v1387_v33 = vld [vmem:[%s1819_s0 + $0x78] sm:$0xff]   ;;  %v1390_v34 = vld [vmem:[%s1819_s0 + $0x80] sm:$0xff]   ;;  %v1391_v35 = vld [vmem:[%s1819_s0 + $0x88] sm:$0xff]  }
  0x38   :  { %v1394_v36 = vld [vmem:[%s1819_s0 + $0x90] sm:$0xff]   ;;  %v1395_v37 = vld [vmem:[%s1819_s0 + $0x98] sm:$0xff]   ;;  %v1398_v38 = vld [vmem:[%s1819_s0 + $0xa0] sm:$0xff]  }
  0x39   :  { %v1399_v39 = vld [vmem:[%s1819_s0 + $0xa8] sm:$0xff]   ;;  %v1400_v40 = vld [vmem:[%s1822_s3 + $0x38] sm:$0xff]   ;;  %v1401_v42 = vld [vmem:[%s1822_s3 + $0x30] sm:$0xff]  }
  0x3a   :  { %1250 = vmatmul.mubr.bf16.gmra.mxu0 %v1375_v22  ;;  %1294 = vmatmul.mubr.bf16.gmra.mxu1 %v1393_v23  ;;  %v1402_v43 = vld [vmem:[%s1822_s3 + $0x28] sm:$0xff]   ;;  %v1403_v44 = vld [vmem:[%s1822_s3 + $0x20] sm:$0xff]   ;;  %v1404_v45 = vld [vmem:[%s1822_s3 + $0x18] sm:$0xff]  }
  0x3b   :  { %1253 = vmatprep.mubr.bf16.mxu0 %v1376_v24  ;;  %1297 = vmatprep.mubr.bf16.mxu1 %v1396_v25  ;;  %v1405_v46 = vld [vmem:[%s1822_s3 + $0x10] sm:$0xff]   ;;  %v1406_v47 = vld [vmem:[%s1822_s3 + $0x8] sm:$0xff]   ;;  %v1407_v48 = vld [vmem:[%s1822_s3] sm:$0xff]  }
  0x3c   :  { %1302 = vmatpush3.bf16.msra.mxu1 %v1400_v40  ;;  %v1652_v53 = vld [vmem:[%s1821_s2] ss:$0 sm:$0xff] }
  0x3d   :  { %1303 = vmatprep.subr.bf16.mxu1 %v1442_v41 }
  0x40   :  { %1304 = vmatpush3.bf16.msra.mxu1 %v1401_v42 }
  0x41   :  { %1305 = vmatprep.subr.bf16.mxu1 %v1442_v41 }
  0x42   :  { %1254 = vmatmul.mubr.bf16.gmra.mxu0 %v1377_v26  ;;  %1298 = vmatmul.mubr.bf16.gmra.mxu1 %v1397_v27 }
  0x43   :  { %1257 = vmatprep.mubr.bf16.mxu0 %v1378_v28  ;;  %1317 = vmatprep.mubr.msk.bf16.mxu1 %vm1443_vm0, %v1442_v41 }
  0x44   :  { %1306 = vmatpush3.bf16.msra.mxu1 %v1402_v43 }
  0x45   :  { %1307 = vmatprep.subr.bf16.mxu1 %v1442_v41 }
  0x48   :  { %1308 = vmatpush3.bf16.msra.mxu1 %v1403_v44 }
  0x49   :  { %1309 = vmatprep.subr.bf16.mxu1 %v1442_v41 }
  0x4a   :  { %1258 = vmatmul.mubr.bf16.gmra.mxu0 %v1379_v29 }
  0x4b   :  { %1261 = vmatprep.mubr.bf16.mxu0 %v1382_v30 }
  0x4c   :  { %1310 = vmatpush3.bf16.msra.mxu1 %v1404_v45 }
  0x4d   :  { %1311 = vmatprep.subr.bf16.mxu1 %v1442_v41 }
  0x50   :  { %1312 = vmatpush3.bf16.msra.mxu1 %v1405_v46 }
  0x51   :  { %1313 = vmatprep.subr.bf16.mxu1 %v1442_v41 }
  0x52   :  { %1262 = vmatmul.mubr.bf16.gmra.mxu0 %v1383_v31 }
  0x53   :  { %1265 = vmatprep.mubr.bf16.mxu0 %v1386_v32 }
  0x54   :  { %1314 = vmatpush3.bf16.msra.mxu1 %v1406_v47 }
  0x55   :  { %1315 = vmatprep.subr.bf16.mxu1 %v1442_v41 }
  0x58   :  { %1316 = vmatpush3.bf16.msra.mxu1 %v1407_v48 }
  0x59   :  { %1321 = vmatprep.subr.bf16.mxu1 %v1442_v41 }
  0x5a   :  { %1266 = vmatmul.mubr.bf16.gmra.mxu0 %v1387_v33 }
  0x5b   :  { %1269 = vmatprep.mubr.bf16.mxu0 %v1390_v34 }
  0x62   :  { %1270 = vmatmul.mubr.bf16.gmra.mxu0 %v1391_v35 }
  0x63   :  { %1273 = vmatprep.mubr.bf16.mxu0 %v1394_v36 }
  0x6a   :  { %1274 = vmatmul.mubr.bf16.gmra.mxu0 %v1395_v37 }
  0x6b   :  { %1277 = vmatprep.mubr.bf16.mxu0 %v1398_v38 }
  0x72   :  { %1278 = vmatmul.mubr.bf16.gmra.mxu0 %v1399_v39 }
  0xe2   :  { %v1239_v49 = vpop.f32.mrf.mxu0  ;;  %v1645_v50 = vpop.f32.mrf.mxu1 }
  0xe3   :  { %v405_v58 = vadd.f32 %v1239_v49, %v1652_v53 }
  0xe4   :  { %v396_v51 = vpop.f32.mrf.mxu0  ;;  %v1647_v52 = vpop.f32.mrf.mxu1 }
  0xe5   :  { %v397_v56 = vadd.f32 %v1652_v53, %v396_v51  ;;  %v653_v2 = vmax.f32 %v405_v58, 0.0 }
  0xe6   :  { %v1240_v54 = vpop.f32.mrf.mxu0  ;;  %v1654_v55 = vpop.f32.mrf.mxu1 }
  0xe7   :  { %v651_v62 = vmax.f32 %v397_v56, 0.0  ;;  %v408_v63 = vadd.f32 %v1240_v54, %v1652_v53 }
  0xe8   :  { %v399_v57 = vpop.f32.mrf.mxu0  ;;  %v1659_v61 = vpop.f32.mrf.mxu1 }
  0xe9   :  { %v400_v59 = vadd.f32 %v1652_v53, %v399_v57  ;;  %v654_v7 = vmax.f32 %v408_v63, 0.0 }
  0xea   :  { %v1243_v60 = vpop.f32.mrf.mxu0  ;;  %v1663_v6 = vpop.f32.mrf.mxu1 }
  0xeb   :  { %v652_v0 = vmax.f32 %v400_v59, 0.0  ;;  %v421_v10 = vadd.f32 %v1243_v60, %v1652_v53 }
  0xec   :  { %v412_v1 = vpop.f32.mrf.mxu0  ;;  %v1667_v15 = vpop.f32.mrf.mxu1 }
  0xed   :  { %v716_v3 = vadd.f32 %v652_v0, %v651_v62  ;;  %v413_v4 = vadd.f32 %v1652_v53, %v412_v1  ;;  %v657_v20 = vmax.f32 %v421_v10, 0.0 }
  0xee   :  { %v1244_v5 = vpop.f32.mrf.mxu0  ;;  %v1670_v23 = vpop.f32.mrf.mxu1 }
  0xef   :  { %v717_v8 = vadd.f32 %v716_v3, %v653_v2  ;;  %v655_v11 = vmax.f32 %v413_v4, 0.0  ;;  %v424_v17 = vadd.f32 %v1244_v5, %v1652_v53 }
  0xf0   :  { %v415_v9 = vpop.f32.mrf.mxu0  ;;  %v591_v32 = vpop.f32.mrf.mxu1 }
  0xf1   :  { %v718_v12 = vadd.f32 %v717_v8, %v654_v7  ;;  %v416_v13 = vadd.f32 %v1652_v53, %v415_v9  ;;  %v658_v24 = vmax.f32 %v424_v17, 0.0 }
  0xf2   :  { %v1247_v14 = vpop.f32.mrf.mxu0  ;;  %v1677_v42 = vpop.f32.mrf.mxu1 }
  0xf3   :  { %v719_v16 = vadd.f32 %v718_v12, %v655_v11  ;;  %v656_v18 = vmax.f32 %v416_v13, 0.0  ;;  %v437_v29 = vadd.f32 %v1247_v14, %v1652_v53 }
  0xf4   :  { %v428_v19 = vpop.f32.mrf.mxu0  ;;  %v1681_v56 = vpop.f32.mrf.mxu1 }
  0xf5   :  { %v720_v21 = vadd.f32 %v719_v16, %v656_v18  ;;  %v429_v26 = vadd.f32 %v1652_v53, %v428_v19  ;;  %v661_v37 = vmax.f32 %v437_v29, 0.0 }
  0xf6   :  { %v1248_v22 = vpop.f32.mrf.mxu0  ;;  %v1684_v2 = vpop.f32.mrf.mxu1 }
  0xf7   :  { %v721_v25 = vadd.f32 %v720_v21, %v657_v20  ;;  %v659_v33 = vmax.f32 %v429_v26, 0.0  ;;  %v440_v34 = vadd.f32 %v1248_v22, %v1652_v53 }
  0xf8   :  { %v431_v27 = vpop.f32.mrf.mxu0  ;;  %v1688_v10 = vpop.f32.mrf.mxu1 }
  0xf9   :  { %v722_v28 = vadd.f32 %v721_v25, %v658_v24  ;;  %v432_v30 = vadd.f32 %v1652_v53, %v431_v27  ;;  %v662_v43 = vmax.f32 %v440_v34, 0.0 }
  0xfa   :  { %v1251_v31 = vpop.f32.mrf.mxu0  ;;  %v1295_v17 = vpop.f32.mrf.mxu1 }
  0xfb   :  { %v660_v35 = vmax.f32 %v432_v30, 0.0  ;;  %v723_v45 = vrot.slane %v722_v28, 4  ;;  %v453_v47 = vadd.f32 %v1251_v31, %v1652_v53 }
  0xfc   :  { %v444_v36 = vpop.f32.mrf.mxu0  ;;  %v620_v24 = vpop.f32.mrf.mxu1 }
  0xfd   :  { %v729_v38 = vadd.f32 %v660_v35, %v659_v33  ;;  %v445_v39 = vadd.f32 %v1652_v53, %v444_v36  ;;  %v724_v62 = vadd.f32 %v723_v45, %v722_v28  ;;  %v665_v63 = vmax.f32 %v453_v47, 0.0 }
  0xfe   :  { %v1252_v40 = vpop.f32.mrf.mxu0  ;;  %v1296_v30 = vpop.f32.mrf.mxu1  ;;  %v589_v35 = vadd.f32 %v1652_v53, %v1667_v15  ;;  %v597_v45 = vadd.f32 %v1663_v6, %v1652_v53  ;;  %v621_v15 = vadd.f32 %v1652_v53, %v620_v24 }
  0xff   :  { %v730_v44 = vadd.f32 %v729_v38, %v661_v37  ;;  %v663_v48 = vmax.f32 %v445_v39, 0.0  ;;  %v456_v58 = vadd.f32 %v1252_v40, %v1652_v53  ;;  %v725_v7 = vrot.slane %v724_v62, 2 }
 0x100   :  { %v447_v46 = vpop.f32.mrf.mxu0  ;;  %v592_v37 = vadd.f32 %v1652_v53, %v591_v32  ;;  %v701_v6 = vmax.f32 %v597_v45, 0.0 }
 0x101   :  { %v731_v49 = vadd.f32 %v730_v44, %v662_v43  ;;  %v448_v51 = vadd.f32 %v1652_v53, %v447_v46  ;;  %v666_v3 = vmax.f32 %v456_v58, 0.0  ;;  %v726_v13 = vadd.f32 %v725_v7, %v724_v62  ;;  %v623_v43 = vpop.f32.mrf.mxu1 }
 0x102   :  { %v1255_v54 = vpop.f32.mrf.mxu0  ;;  %v629_v7 = vadd.f32 %v1295_v17, %v1652_v53  ;;  %v632_v17 = vadd.f32 %v1296_v30, %v1652_v53 }
 0x103   :  { %v732_v57 = vadd.f32 %v731_v49, %v663_v48  ;;  %v664_v59 = vmax.f32 %v448_v51, 0.0  ;;  %v727_v20 = vrot.slane %v726_v13, 1  ;;  %v699_v48 = vmax.f32 %v589_v35, 0.0  ;;  %v1715_v62 = vpop.f32.mrf.mxu1 }
 0x104   :  { %v460_v60 = vpop.f32.mrf.mxu0  ;;  %v700_v49 = vmax.f32 %v592_v37, 0.0  ;;  %v624_v51 = vadd.f32 %v1652_v53, %v623_v43  ;;  %v469_v32 = vadd.f32 %v1255_v54, %v1652_v53 }
 0x105   :  { %v733_v0 = vadd.f32 %v732_v57, %v664_v59  ;;  %v728_v27 = vadd.f32 %v727_v20, %v726_v13  ;;  %v461_v38 = vadd.f32 %v1652_v53, %v460_v60 }
 0x106   :  { %v1256_v1 = vpop.f32.mrf.mxu0  ;;  %v708_v54 = vmax.f32 %v624_v51, 0.0 }
 0x107   :  { %v734_v4 = vadd.f32 %v733_v0, %v665_v63  ;;  %v667_v57 = vmax.f32 %v461_v38, 0.0  ;;  %v472_v13 = vadd.f32 %v1256_v1, %v1652_v53 }
 0x108   :  { %v463_v5 = vpop.f32.mrf.mxu0 }
 0x109   :  { %v735_v8 = vadd.f32 %v734_v4, %v666_v3  ;;  %v464_v33 = vadd.f32 %v1652_v53, %v463_v5  ;;  %v600_v3 = vadd.f32 %v1670_v23, %v1652_v53  ;;  %v794_v5 = vadd.f32 %v700_v49, %v699_v48 }
 0x10a   :  { %v1686_v9 = vpop.f32.mrf.mxu0 }
 0x10b   :  { %v736_v11 = vrot.slane %v735_v8, 4  ;;  %v668_v44 = vmax.f32 %v464_v33, 0.0  ;;  %v702_v23 = vmax.f32 %v600_v3, 0.0 }
 0x10c   :  { %v1690_v12 = vpop.f32.mrf.mxu0 }
 0x10d   :  { %v737_v14 = vadd.f32 %v736_v11, %v735_v8  ;;  %v742_v63 = vadd.f32 %v668_v44, %v667_v57  ;;  %v707_v8 = vmax.f32 %v621_v15, 0.0  ;;  %v669_v11 = vmax.f32 %v469_v32, 0.0 }
 0x10e   :  { %v1692_v16 = vpop.f32.mrf.mxu0  ;;  %v477_v1 = vadd.f32 %v1652_v53, %v1690_v12 }
 0x10f   :  { %v738_v18 = vrot.slane %v737_v14, 2  ;;  %v743_v24 = vadd.f32 %v742_v63, %v669_v11  ;;  %v807_v33 = vadd.f32 %v708_v54, %v707_v8  ;;  %v613_v8 = vadd.f32 %v1677_v42, %v1652_v53 }
 0x110   :  { %v1694_v19 = vpop.f32.mrf.mxu0  ;;  %v671_v49 = vmax.f32 %v477_v1, 0.0 }
 0x111   :  { %v739_v21 = vadd.f32 %v738_v18, %v737_v14  ;;  %v480_v43 = vadd.f32 %v1652_v53, %v1694_v19 }
 0x112   :  { %v1263_v22 = vpop.f32.mrf.mxu0 }
 0x113   :  { %v740_v25 = vrot.slane %v739_v21, 1  ;;  %v501_v58 = vadd.f32 %v1263_v22, %v1652_v53  ;;  %v636_v22 = vpop.f32.mrf.mxu1  ;;  %v672_v3 = vmax.f32 %v480_v43, 0.0 }
 0x114   :  { %v492_v26 = vpop.f32.mrf.mxu0  ;;  %v637_v57 = vadd.f32 %v1652_v53, %v636_v22 }
 0x115   :  { %v741_v28 = vadd.f32 %v740_v25, %v739_v21  ;;  %v493_v39 = vadd.f32 %v1652_v53, %v492_v26  ;;  %v677_v14 = vmax.f32 %v501_v58, 0.0  ;;  %v605_v21 = vadd.f32 %v1652_v53, %v1681_v56  ;;  %v1729_v38 = vpop.f32.mrf.mxu1 }
 0x116   :  { %v1264_v29 = vpop.f32.mrf.mxu0  ;;  %v608_v58 = vadd.f32 %v1652_v53, %v1688_v10  ;;  %v485_v10 = vadd.f32 %v1686_v9, %v1652_v53 }
 0x117   :  { %v1696_v31 = vsel %vm828_vm1, %v741_v28, %v728_v27  ;;  %v675_v59 = vmax.f32 %v493_v39, 0.0  ;;  %v504_v18 = vadd.f32 %v1264_v29, %v1652_v53  ;;  %v795_v27 = vadd.f32 %v794_v5, %v701_v6  ;;  %v639_v6 = vpop.f32.mrf.mxu1 }
 0x118   :  { %v495_v34 = vpop.f32.mrf.mxu0  ;;  %v709_v28 = vmax.f32 %v629_v7, 0.0  ;;  %v703_v37 = vmax.f32 %v605_v21, 0.0  ;;  %v640_v21 = vadd.f32 %v1652_v53, %v639_v6 }
 0x119   :  { %v496_v36 = vadd.f32 %v1652_v53, %v495_v34  ;;  %v670_v34 = vmax.f32 %v472_v13, 0.0  ;;  %v678_v35 = vmax.f32 %v504_v18, 0.0  ;;  %v711_v18 = vmax.f32 %v637_v57, 0.0 }
 0x11a   :  { %v1705_v40 = vpop.f32.mrf.mxu0  ;;  %v808_v32 = vadd.f32 %v807_v33, %v709_v28  ;;  %v645_v28 = vadd.f32 %v1715_v62, %v1652_v53 }
 0x11b   :  { %v676_v46 = vmax.f32 %v496_v36, 0.0  ;;  %v744_v39 = vadd.f32 %v743_v24, %v670_v34  ;;  %v517_v22 = vadd.f32 %v1705_v40, %v1652_v53  ;;  %v488_v40 = vadd.f32 %v1692_v16, %v1652_v53 }
 0x11c   :  { %v508_v47 = vpop.f32.mrf.mxu0 }
 0x11d   :  { %v755_v0 = vadd.f32 %v676_v46, %v675_v59  ;;  %v509_v29 = vadd.f32 %v1652_v53, %v508_v47  ;;  %v796_v46 = vadd.f32 %v795_v27, %v702_v23  ;;  %v710_v47 = vmax.f32 %v632_v17, 0.0 }
 0x11e   :  { %v1713_v60 = vpop.f32.mrf.mxu0  ;;  %v704_v27 = vmax.f32 %v608_v58, 0.0 }
 0x11f   :  { %v756_v25 = vadd.f32 %v755_v0, %v677_v14  ;;  %v679_v15 = vmax.f32 %v509_v29, 0.0  ;;  %v745_v0 = vadd.f32 %v744_v39, %v671_v49  ;;  %v797_v24 = vadd.f32 %v796_v46, %v703_v37 }
 0x120   :  { %v511_v4 = vpop.f32.mrf.mxu0  ;;  %v712_v37 = vmax.f32 %v640_v21, 0.0  ;;  %v520_v39 = vadd.f32 %v1713_v60, %v1652_v53  ;;  %v674_v49 = vmax.f32 %v488_v40, 0.0 }
 0x121   :  { %v757_v44 = vadd.f32 %v756_v25, %v678_v35  ;;  %v512_v30 = vadd.f32 %v1652_v53, %v511_v4  ;;  %v673_v35 = vmax.f32 %v485_v10, 0.0 }
 0x122   :  { %v1271_v20 = vpop.f32.mrf.mxu0  ;;  %v682_v57 = vmax.f32 %v520_v39, 0.0 }
 0x123   :  { %v533_v12 = vadd.f32 %v1271_v20, %v1652_v53  ;;  %v758_v4 = vadd.f32 %v757_v44, %v679_v15  ;;  %v680_v5 = vmax.f32 %v512_v30, 0.0  ;;  %v809_v20 = vadd.f32 %v808_v32, %v710_v47 }
 0x124   :  { %v524_v26 = vpop.f32.mrf.mxu0  ;;  %v705_v30 = vmax.f32 %v613_v8, 0.0  ;;  %v798_v15 = vadd.f32 %v797_v24, %v704_v27  ;;  %v648_v32 = vadd.f32 %v1729_v38, %v1652_v53 }
 0x125   :  { %v525_v56 = vadd.f32 %v1652_v53, %v524_v26  ;;  %v685_v54 = vmax.f32 %v533_v12, 0.0  ;;  %v746_v26 = vadd.f32 %v745_v0, %v672_v3  ;;  %v759_v42 = vadd.f32 %v758_v4, %v680_v5 }
 0x126   :  { %v1272_v36 = vpop.f32.mrf.mxu0  ;;  %v810_v29 = vadd.f32 %v809_v20, %v711_v18  ;;  %v573_v18 = vadd.f32 %v1652_v53, %v1647_v52 }
 0x127   :  { %v683_v19 = vmax.f32 %v525_v56, 0.0  ;;  %v536_v59 = vadd.f32 %v1272_v36, %v1652_v53  ;;  %v681_v56 = vmax.f32 %v517_v22, 0.0  ;;  %v747_v44 = vadd.f32 %v746_v26, %v673_v35 }
 0x128   :  { %v527_v45 = vpop.f32.mrf.mxu0  ;;  %v584_v35 = vadd.f32 %v1654_v55, %v1652_v53 }
 0x129   :  { %v528_v48 = vadd.f32 %v1652_v53, %v527_v45  ;;  %v686_v25 = vmax.f32 %v536_v59, 0.0  ;;  %v760_v12 = vadd.f32 %v759_v42, %v681_v56 }
 0x12a   :  { %v1275_v51 = vpop.f32.mrf.mxu0 }
 0x12b   :  { %v684_v63 = vmax.f32 %v528_v48, 0.0  ;;  %v549_v9 = vadd.f32 %v1275_v51, %v1652_v53  ;;  %v616_v48 = vadd.f32 %v1684_v2, %v1652_v53  ;;  %v713_v51 = vmax.f32 %v645_v28, 0.0 }
 0x12c   :  { %v540_v7 = vpop.f32.mrf.mxu0  ;;  %v761_v3 = vadd.f32 %v760_v12, %v682_v57 }
 0x12d   :  { %v768_v11 = vadd.f32 %v684_v63, %v683_v19  ;;  %v541_v13 = vadd.f32 %v1652_v53, %v540_v7  ;;  %v689_v47 = vmax.f32 %v549_v9, 0.0  ;;  %v811_v19 = vadd.f32 %v810_v29, %v712_v37 }
 0x12e   :  { %v1276_v14 = vpop.f32.mrf.mxu0  ;;  %v748_v63 = vadd.f32 %v747_v44, %v674_v49  ;;  %v706_v5 = vmax.f32 %v616_v48, 0.0  ;;  %v799_v7 = vadd.f32 %v798_v15, %v705_v30  ;;  %v762_v20 = vrot.slane %v761_v3, 4 }
 0x12f   :  { %v769_v23 = vadd.f32 %v768_v11, %v685_v54  ;;  %v687_v33 = vmax.f32 %v541_v13, 0.0  ;;  %v552_v45 = vadd.f32 %v1276_v14, %v1652_v53  ;;  %v714_v54 = vmax.f32 %v648_v32, 0.0 }
 0x130   :  { %v543_v17 = vpop.f32.mrf.mxu0  ;;  %v812_v11 = vadd.f32 %v811_v19, %v713_v51  ;;  %v749_v14 = vrot.slane %v748_v63, 4  ;;  %v800_v24 = vadd.f32 %v799_v7, %v706_v5  ;;  %v695_v9 = vmax.f32 %v573_v18, 0.0 }
 0x131   :  { %v770_v34 = vadd.f32 %v769_v23, %v686_v25  ;;  %v544_v1 = vadd.f32 %v1652_v53, %v543_v17  ;;  %v690_v6 = vmax.f32 %v552_v45, 0.0  ;;  %v576_v23 = vadd.f32 %v1652_v53, %v1659_v61 }
 0x132   :  { %v1279_v36 = vpop.f32.mrf.mxu0  ;;  %v813_v26 = vadd.f32 %v812_v11, %v714_v54  ;;  %v750_v28 = vadd.f32 %v749_v14, %v748_v63  ;;  %v581_v17 = vadd.f32 %v1645_v50, %v1652_v53  ;;  %v698_v44 = vmax.f32 %v584_v35, 0.0  ;;  %v1408_v14 = vld [vmem:[%s1824_s5 + $0x38] sm:$0xff]  }
 0x133   :  { %v771_v43 = vadd.f32 %v770_v34, %v687_v33  ;;  %v688_v62 = vmax.f32 %v544_v1, 0.0  ;;  %v565_v2 = vadd.f32 %v1279_v36, %v1652_v53  ;;  %v763_v33 = vadd.f32 %v762_v20, %v761_v3  ;;  %v1410_v20 = vld [vmem:[%s1824_s5 + $0x28] sm:$0xff]  }
 0x134   :  { %v556_v46 = vpop.f32.mrf.mxu0  ;;  %v801_v1 = vrot.slane %v800_v24, 4  ;;  %v696_v40 = vmax.f32 %v576_v23, 0.0  ;;  %v814_v29 = vrot.slane %v813_v26, 4  ;;  %v751_v37 = vrot.slane %v750_v28, 2  ;;  %v1415_v23 = vld [vmem:[%s1824_s5] sm:$0xff]  }
 0x135   :  { %v772_v16 = vadd.f32 %v771_v43, %v688_v62  ;;  %v557_v59 = vadd.f32 %v1652_v53, %v556_v46  ;;  %v693_v21 = vmax.f32 %v565_v2, 0.0  ;;  %v697_v61 = vmax.f32 %v581_v17, 0.0 }
 0x136   :  { %v1280_v60 = vpop.f32.mrf.mxu0  ;;  %v764_v56 = vrot.slane %v763_v33, 2  ;;  %v802_v43 = vadd.f32 %v801_v1, %v800_v24  ;;  %v815_v30 = vadd.f32 %v814_v29, %v813_v26  ;;  %v752_v45 = vadd.f32 %v751_v37, %v750_v28  ;;  %v1413_v24 = vld [vmem:[%s1824_s5 + $0x10] sm:$0xff]   ;;  %v1145_v26 = vld [vmem:[%s1823_s4] ss:$0 sm:$0xff]  ;;  %s1444_s4 = smov [#allocation3]  }
 0x137   :  { %v773_v58 = vadd.f32 %v772_v16, %v689_v47  ;;  %v691_v38 = vmax.f32 %v557_v59, 0.0  ;;  %v568_v13 = vadd.f32 %v1280_v60, %v1652_v53 }
 0x138   :  { %v559_v0 = vpop.f32.mrf.mxu0  ;;  %v765_v46 = vadd.f32 %v764_v56, %v763_v33  ;;  %v803_v48 = vrot.slane %v802_v43, 2  ;;  %v816_v16 = vrot.slane %v815_v30, 2 }
 0x139   :  { %v560_v4 = vadd.f32 %v1652_v53, %v559_v0  ;;  %v774_v8 = vadd.f32 %v773_v58, %v690_v6  ;;  %v694_v42 = vmax.f32 %v568_v13, 0.0  ;;  %v753_v53 = vrot.slane %v752_v45, 1 }
 0x13a   :  { %v766_v55 = vrot.slane %v765_v46, 1  ;;  %v804_v51 = vadd.f32 %v803_v48, %v802_v43  ;;  %v817_v60 = vadd.f32 %v816_v16, %v815_v30 }
 0x13b   :  { %v692_v10 = vmax.f32 %v560_v4, 0.0  ;;  %v775_v25 = vrot.slane %v774_v8, 4  ;;  %v754_v58 = vadd.f32 %v753_v53, %v752_v45 }
 0x13c   :  { %v767_v19 = vadd.f32 %v766_v55, %v765_v46  ;;  %v805_v63 = vrot.slane %v804_v51, 1  ;;  %v818_v0 = vrot.slane %v817_v60, 1 }
 0x13d   :  { %v781_v22 = vadd.f32 %v692_v10, %v691_v38  ;;  %v776_v52 = vadd.f32 %v775_v25, %v774_v8  ;;  %v831_v2 = vsel %vm830_vm2, %v754_v58, %v1696_v31  ;;  %v1409_v31 = vld [vmem:[%s1824_s5 + $0x30] sm:$0xff]   ;;  %v1414_v25 = vld [vmem:[%s1824_s5 + $0x8] sm:$0xff]  }
 0x13e   :  { %v833_v4 = vsel %vm832_vm3, %v767_v19, %v831_v2  ;;  %v806_v7 = vadd.f32 %v805_v63, %v804_v51  ;;  %v819_v54 = vadd.f32 %v818_v0, %v817_v60 }
 0x13f   :  { %v782_v27 = vadd.f32 %v781_v22, %v693_v21  ;;  %v777_v62 = vrot.slane %v776_v52, 2  ;;  %v1411_v21 = vld [vmem:[%s1824_s5 + $0x20] sm:$0xff]   ;;  %v1412_v22 = vld [vmem:[%s1824_s5 + $0x18] sm:$0xff]   ;;  %s1092_s5 = sshll.u32 %s1444_s4, 4  ;;  %s1093_s5 = int_to_ptr.vmem [resolvable:$true] %s1092_s5 }
 0x140   :  { %p1425_p1 = scmp.lt.s32.totalorder %s1093_s5, %s1093_s5 }
 0x141   :  { %v783_v34 = vadd.f32 %v782_v27, %v694_v42  ;;  %v778_v47 = vadd.f32 %v777_v62, %v776_v52 }
 0x143   :  { %v784_v36 = vadd.f32 %v783_v34, %v695_v9  ;;  %v779_v32 = vrot.slane %v778_v47, 1 }
 0x145   :  { %v785_v39 = vadd.f32 %v784_v36, %v696_v40  ;;  %v780_v6 = vadd.f32 %v779_v32, %v778_v47 }
 0x147   :  { %v786_v50 = vadd.f32 %v785_v39, %v697_v61  ;;  %v835_v8 = vsel %vm834_vm4, %v780_v6, %v833_v4 }
 0x149   :  { %v787_v12 = vadd.f32 %v786_v50, %v698_v44 }
 0x14b   :  { %v788_v49 = vrot.slane %v787_v12, 4 }
 0x14d   :  { %v789_v15 = vadd.f32 %v788_v49, %v787_v12 }
 0x14f   :  { %v790_v57 = vrot.slane %v789_v15, 2 }
 0x151   :  { %v791_v59 = vadd.f32 %v790_v57, %v789_v15 }
 0x153   :  { %v792_v3 = vrot.slane %v791_v59, 1 }
 0x155   :  { %v793_v5 = vadd.f32 %v792_v3, %v791_v59 }
 0x157   :  { %v837_v11 = vsel %vm836_vm5, %v793_v5, %v835_v8 }
 0x158   :  { %v839_v38 = vsel %vm838_vm6, %v806_v7, %v837_v11 }
 0x159   :  { %v841_v13 = vsel %vm840_vm7, %v819_v54, %v839_v38 }
 0x15a   :  { %v849_v10 = vmul.f32 0.015625, %v841_v13 }
 0x15c   :  { %v850_v18 = vpack.c.bf16 %v849_v10, %v849_v10 }
 0x15e   :  { %1318 = vmatmul.mubr.bf16.vlgmr.msra.gmra.mxu1 %v850_v18 }
 0x15f   :  { %1322 = vmatpush3.bf16.msra.mxu1 %v1408_v14  ;;  %1337 = vmatprep.mubr.msk.bf16.mxu1 %vm1443_vm0, %v1442_v41 }
 0x160   :  { %1323 = vmatprep.subr.bf16.mxu1 %v1442_v41 }
 0x163   :  { %1324 = vmatpush3.bf16.msra.mxu1 %v1409_v31 }
 0x164   :  { %1325 = vmatprep.subr.bf16.mxu1 %v1442_v41 }
 0x167   :  { %1326 = vmatpush3.bf16.msra.mxu1 %v1410_v20 }
 0x168   :  { %1327 = vmatprep.subr.bf16.mxu1 %v1442_v41 }
 0x16b   :  { %1328 = vmatpush3.bf16.msra.mxu1 %v1411_v21 }
 0x16c   :  { %1329 = vmatprep.subr.bf16.mxu1 %v1442_v41 }
 0x16f   :  { %1330 = vmatpush3.bf16.msra.mxu1 %v1412_v22 }
 0x170   :  { %1331 = vmatprep.subr.bf16.mxu1 %v1442_v41 }
 0x173   :  { %1332 = vmatpush3.bf16.msra.mxu1 %v1413_v24 }
 0x174   :  { %1333 = vmatprep.subr.bf16.mxu1 %v1442_v41 }
 0x177   :  { %1334 = vmatpush3.bf16.msra.mxu1 %v1414_v25 }
 0x178   :  { %1335 = vmatprep.subr.bf16.mxu1 %v1442_v41  ;;  %v1154_v41 = vld [vmem:[%s1825_s6] ss:$0 sm:$0xff]  ;;  %s1420_s6 = scalar_lea.vmem %s1093_s5, 128 }
 0x179   :  { %p1421_p0 = scmp.ne.s32.totalorder %s1093_s5, %s1420_s6  ;;  %p1426_p2 = scmp.lt.s32.totalorder %s1420_s6, %s1420_s6 }
 0x17b   :  { %1336 = vmatpush3.bf16.msra.mxu1 %v1415_v23  ;;  %p1427_p3 = por %p1426_p2, %p1425_p1 }
 0x17d   :  { %p1428_p4 = pnand %p1427_p3, %p1421_p0 }
 0x21e   :  { %v956_v42 = vpop.f32.mrf.mxu1 }
 0x21f   :  { %v957_v27 = vadd.f32 %v1145_v26, %v956_v42 }
 0x220   :  { %v1319_v28 = vpop.f32.mrf.mxu1 }
 0x221   :  { %v962_v17 = vmax.f32 %v957_v27, 0.0 }
 0x222   :  { %v959_v9 = vpop.f32.mrf.mxu1 }
 0x223   :  { %v963_v33 = vpack.c.bf16 %v962_v17, %v962_v17 }
 0x224   :  { %v1320_v34 = vpop.f32.mrf.mxu1 }
 0x225   :  { %1085 = vst [vmem:[%s1827_s8] sm:$0xf] %v963_v33  ;;  %1338 = vmatmul.mubr.bf16.vlgmr.msra.gmra.mxu1 %v963_v33 }
 0x2e5   :  { %v1069_v1 = vpop.f32.mrf.mxu1 }
 0x2e6   :  { %v1070_v52 = vadd.f32 %v1154_v41, %v1069_v1 }
 0x2e7   :  { %v1339_v35 = vpop.f32.mrf.mxu1 }
 0x2e8   :  { %1075 = vmax.xlane.f32.xlu0 %v1070_v52 }
 0x2e9   :  { %v1072_v40 = vpop.f32.mrf.mxu1 }
 0x2eb   :  { %v1340_v29 = vpop.f32.mrf.mxu1 }
 0x371   :  { %v1076_v36 = vpop.xlane.xlu0 %1075 }
 0x372   :  { %v1077_v37 = vsub.f32 %v1070_v52, %v1076_v36 }
 0x374   :  { %v1078_v61 = vmul.f32 1.442695, %v1077_v37 }
 0x376   :  { %1416 = vpow2.f32 %v1078_v61 }
 0x383   :  { %v1417_v56 = vpop.eup %1416 }
 0x384   :  { %1080 = vadd.xlane.f32.xlu0 %v1417_v56 }
 0x40d   :  { %v1081_v39 = vpop.xlane.xlu0 %1080 }
 0x40e   :  { %1418 = vrcp.f32 %v1081_v39 }
 0x41b   :  { %v1419_v43 = vpop.eup %1418 }
 0x41c   :  { %v1083_v62 = vmul.f32 %v1419_v43, %v1417_v56 }
 0x41e   :  { %1084 = vst [vmem:[#allocation3] sm:$0xff] %v1083_v62 }
 0x41f   :  { %1431 = shalt.err (!%p1428_p4)
}
 0x420   :  { %1095 = dma.vmem_to_hbm [thread:$0]  %s1093_s5, 128, %s1826_s7, [#allocation4]  }
 0x421   :  { %1440 = dma.done.wait [#allocation4], 128  }
 0x422   :  { %1441 = vsyncadd [#allocation4], 4294967168 }
 0x423   :  { %1103 = vsyncpa [#allocation4], 1 }

</bundles_post_ra>
